<compile_context>
chip_gen: v7x
topology: tpu7x:2x2x1
jax: 0.10.0
libtpu: 0.0.40
codegen_flags: <defaults>
</compile_context>

<pallas_src>
import jax
import jax.numpy as jnp
from jax import lax
from jax.experimental import pallas as pl
from jax.experimental.pallas import tpu as pltpu

LANE = 128
SUBLANE = 8
SUB = 128   # rows per in-kernel sub-block


def _round_up(n, m):
    return (n + m - 1) // m * m


def mlp_kernel(x_ref,
               w1_ref, b1_ref,
               w2_ref, b2_ref,
               w3_ref, b3_ref,
               w4_ref, b4_ref,
               o_ref):
    tile = x_ref.shape[0]

    def sub_block(row, rows):
        # Cast the f32 input slice to bf16 in-kernel; all matmuls accumulate
        # in f32 on the MXU; bias-add + ReLU stay on the VPU.
        x = x_ref[pl.ds(row, rows), :].astype(jnp.bfloat16)
        h = jnp.dot(x, w1_ref[...], preferred_element_type=jnp.float32)
        h = jnp.maximum(h + b1_ref[...], 0.0).astype(jnp.bfloat16)

        h = jnp.dot(h, w2_ref[...], preferred_element_type=jnp.float32)
        h = jnp.maximum(h + b2_ref[...], 0.0).astype(jnp.bfloat16)

        h = jnp.dot(h, w3_ref[...], preferred_element_type=jnp.float32)
        h = jnp.maximum(h + b3_ref[...], 0.0).astype(jnp.bfloat16)

        # Dropout(p=0.05) in eval mode == identity.
        out = jnp.dot(h, w4_ref[...], preferred_element_type=jnp.float32)
        o_ref[pl.ds(row, rows), :] = (out + b4_ref[...]).astype(o_ref.dtype)

    n_full, rem = divmod(tile, SUB)   # static

    if n_full > 0:
        def body(s, carry):
            sub_block(pl.multiple_of(s * SUB, SUB), SUB)
            return carry
        lax.fori_loop(0, n_full, body, 0, unroll=True)

    if rem > 0:
        sub_block(n_full * SUB, rem)   # static tail sub-block


def prepare_params(params):
    """One-time weight prep (hoisted out of the per-call path).

    params: dict with w1..w4 of shape (in, out) (transpose of PyTorch's
            nn.Linear weight) and b1..b4 of shape (1, out).
    Returns bf16 weights (w4 lane-padded to a multiple of 128 output lanes),
    f32 biases, plus the true n_out for the final lane slice.
    """
    bf16 = jnp.bfloat16
    n_out = params["w4"].shape[1]
    n_out_p = _round_up(n_out, LANE)

    w4p = jnp.zeros((params["w4"].shape[0], n_out_p), bf16)
    w4p = w4p.at[:, :n_out].set(params["w4"].astype(bf16))
    b4p = jnp.zeros((1, n_out_p), jnp.float32)
    b4p = b4p.at[:, :n_out].set(params["b4"].astype(jnp.float32))

    return {
        "w1": params["w1"].astype(bf16), "b1": params["b1"].astype(jnp.float32),
        "w2": params["w2"].astype(bf16), "b2": params["b2"].astype(jnp.float32),
        "w3": params["w3"].astype(bf16), "b3": params["b3"].astype(jnp.float32),
        "w4": w4p, "b4": b4p,
        "n_out": n_out,
    }


def _pick_batch_tile(B):
    if B <= 64:
        # Tiny batch: a single grid step covering everything.
        return _round_up(B, SUBLANE)
    if B <= 2048:
        # Medium: two grid steps so v7x's 2 TensorCores both get work; tiles
        # rounded to the sublane so tail padding (partial last block) is small.
        return _round_up(pl.cdiv(B, 2), SUBLANE)
    # Large: 1024-row tiles amortize per-step overhead and MXU weight loads;
    # VMEM footprint stays tiny (weights ~0.5 MiB, I/O tiles ~1.5 MiB).
    return 1024


def net_forward(x, prepared, *, batch_tile=None):
    """Fused MLP forward.  x: (B, n_in) float32; prepared: prepare_params()."""
    B, n_in = x.shape
    n_out = prepared["n_out"]
    n_out_p = prepared["w4"].shape[1]

    if batch_tile is None:
        batch_tile = _pick_batch_tile(B)
    grid = pl.cdiv(B, batch_tile)

    # Weights/biases: whole array resident in VMEM, outside the batch
    # pipeline (no per-step DMA, no double-buffered copies).
    resident = pl.BlockSpec(memory_space=pltpu.MemorySpace.VMEM)

    out = pl.pallas_call(
        mlp_kernel,
        out_shape=jax.ShapeDtypeStruct((B, n_out_p), jnp.float32),
        grid_spec=pltpu.PrefetchScalarGridSpec(
            num_scalar_prefetch=0,
            grid=(grid,),
            in_specs=[
                # x: unpadded, f32; last block dim == full array dim is legal.
                pl.BlockSpec((batch_tile, n_in), lambda i: (i, 0)),
                resident, resident,   # w1, b1
                resident, resident,   # w2, b2
                resident, resident,   # w3, b3
                resident, resident,   # w4, b4
            ],
            out_specs=pl.BlockSpec((batch_tile, n_out_p), lambda i: (i, 0)),
        ),
        compiler_params=pltpu.CompilerParams(
            dimension_semantics=("parallel",),
        ),
    )(x,
      prepared["w1"], prepared["b1"],
      prepared["w2"], prepared["b2"],
      prepared["w3"], prepared["b3"],
      prepared["w4"], prepared["b4"])

    # Lane-padded (B, 128) f32 buffer; drop the padded output lanes only.
    return out[:, :n_out]


def init_params(key, n_input, n_output):
    """Deterministic init mimicking nn.Linear's U(-1/sqrt(fan_in), 1/sqrt(fan_in))."""
    dims = [(n_input, 128), (128, 256), (256, 512), (512, n_output)]
    params = {}
    for idx, (fan_in, fan_out) in enumerate(dims, start=1):
        key, kw, kb = jax.random.split(key, 3)
        bound = 1.0 / jnp.sqrt(jnp.float32(fan_in))
        params[f"w{idx}"] = jax.random.uniform(
            kw, (fan_in, fan_out), jnp.float32, -bound, bound)
        params[f"b{idx}"] = jax.random.uniform(
            kb, (1, fan_out), jnp.float32, -bound, bound)
    return params


def reference_forward_f32(x, params):
    h = jnp.maximum(x @ params["w1"] + params["b1"], 0.0)
    h = jnp.maximum(h @ params["w2"] + params["b2"], 0.0)
    h = jnp.maximum(h @ params["w3"] + params["b3"], 0.0)
    return h @ params["w4"] + params["b4"]


def reference_forward_bf16(x, params):
    """Same bf16-operand / f32-accumulate arithmetic as the kernel."""
    bf16 = jnp.bfloat16

    def lin(h, w, b):
        return jnp.dot(h.astype(bf16), w.astype(bf16),
                       preferred_element_type=jnp.float32) + b

    h = jnp.maximum(lin(x, params["w1"], params["b1"]), 0.0)
    h = jnp.maximum(lin(h, params["w2"], params["b2"]), 0.0)
    h = jnp.maximum(lin(h, params["w3"], params["b3"]), 0.0)
    return lin(h, params["w4"], params["b4"])


if __name__ == "__main__":
    n_input, n_output = 32, 16

    key = jax.random.PRNGKey(0)
    key, kx1, kx2 = jax.random.split(key, 3)
    params = init_params(key, n_input, n_output)
    prepared = prepare_params(params)   # one-time weight cast/pad

    # Small demo batch (single grid step, single in-kernel sub-block).
    x_small = jax.random.normal(kx1, (8, n_input), dtype=jnp.float32)
    out_small = jax.block_until_ready(net_forward(x_small, prepared))
    assert out_small.shape == (8, n_output)
    ref_bf16 = reference_forward_bf16(x_small, params)
    ref_f32 = reference_forward_f32(x_small, params)
    assert jnp.allclose(out_small, ref_bf16, atol=2e-2, rtol=2e-2)
    assert jnp.allclose(out_small, ref_f32, atol=1e-1, rtol=1e-1)

    # Larger, non-multiple batch: batch_tile=136, grid=2 (partial last block),
    # in-kernel sub-blocks of 128 + 8 rows.
    x_big = jax.random.normal(kx2, (260, n_input), dtype=jnp.float32)
    out_big = jax.block_until_ready(net_forward(x_big, prepared))
    assert out_big.shape == (260, n_output)
    assert jnp.allclose(out_big, reference_forward_bf16(x_big, params),
                        atol=2e-2, rtol=2e-2)

    print("KERNEL_OK")
</pallas_src>

<mosaic_0001>
module attributes {stable_mosaic.version = 11 : i64} {
  func.func @mlp_kernel(%arg0: i32, %arg1: memref<8x32xf32, #tpu.memory_space<vmem>>, %arg2: memref<32x128xbf16, #tpu.memory_space<vmem>>, %arg3: memref<1x128xf32, #tpu.memory_space<vmem>>, %arg4: memref<128x256xbf16, #tpu.memory_space<vmem>>, %arg5: memref<1x256xf32, #tpu.memory_space<vmem>>, %arg6: memref<256x512xbf16, #tpu.memory_space<vmem>>, %arg7: memref<1x512xf32, #tpu.memory_space<vmem>>, %arg8: memref<512x128xbf16, #tpu.memory_space<vmem>>, %arg9: memref<1x128xf32, #tpu.memory_space<vmem>>, %arg10: memref<8x128xf32, #tpu.memory_space<vmem>>) attributes {dimension_semantics = [#tpu.dimension_semantics<parallel>], iteration_bounds = array<i64: 1>, scalar_prefetch = 0 : i64, scratch_operands = 0 : i64, tpu.core_type = #tpu.core_type<tc>, window_params = [{transform_indices = @transform_0, window_bounds = array<i64: 8, 32>}, {pipeline_mode = #tpu.pipeline_mode<synchronous>, transform_indices = @transform_1, window_bounds = array<i64: 32, 128>}, {pipeline_mode = #tpu.pipeline_mode<synchronous>, transform_indices = @transform_2, window_bounds = array<i64: 1, 128>}, {pipeline_mode = #tpu.pipeline_mode<synchronous>, transform_indices = @transform_3, window_bounds = array<i64: 128, 256>}, {pipeline_mode = #tpu.pipeline_mode<synchronous>, transform_indices = @transform_4, window_bounds = array<i64: 1, 256>}, {pipeline_mode = #tpu.pipeline_mode<synchronous>, transform_indices = @transform_5, window_bounds = array<i64: 256, 512>}, {pipeline_mode = #tpu.pipeline_mode<synchronous>, transform_indices = @transform_6, window_bounds = array<i64: 1, 512>}, {pipeline_mode = #tpu.pipeline_mode<synchronous>, transform_indices = @transform_7, window_bounds = array<i64: 512, 128>}, {pipeline_mode = #tpu.pipeline_mode<synchronous>, transform_indices = @transform_8, window_bounds = array<i64: 1, 128>}, {transform_indices = @transform_9, window_bounds = array<i64: 8, 128>}]} {
    %c0 = arith.constant 0 : index
    %c0_0 = arith.constant 0 : index
    %0 = vector.load %arg1[%c0, %c0_0] : memref<8x32xf32, #tpu.memory_space<vmem>>, vector<8x32xf32>
    %1 = arith.truncf %0 : vector<8x32xf32> to vector<8x32xbf16>
    %c0_1 = arith.constant 0 : index
    %c0_2 = arith.constant 0 : index
    %2 = vector.load %arg2[%c0_1, %c0_2] : memref<32x128xbf16, #tpu.memory_space<vmem>>, vector<32x128xbf16>
    %cst = arith.constant dense<0.000000e+00> : vector<8x128xf32>
    %3 = tpu.matmul %1, %2, %cst {dimension_numbers = #tpu.dot_dimension_numbers<[1], [0], [0], [1], [0, 0, 1, 1], [], []>} : vector<8x32xbf16>, vector<32x128xbf16>, vector<8x128xf32> -> vector<8x128xf32>
    %c0_3 = arith.constant 0 : index
    %c0_4 = arith.constant 0 : index
    %4 = vector.load %arg3[%c0_3, %c0_4] : memref<1x128xf32, #tpu.memory_space<vmem>>, vector<1x128xf32>
    %5 = vector.broadcast %4 : vector<1x128xf32> to vector<8x128xf32>
    %6 = arith.addf %3, %5 : vector<8x128xf32>
    %cst_5 = arith.constant 0.000000e+00 : f32
    %7 = vector.broadcast %cst_5 : f32 to vector<8x128xf32>
    %8 = arith.maximumf %6, %7 : vector<8x128xf32>
    %9 = arith.truncf %8 : vector<8x128xf32> to vector<8x128xbf16>
    %c0_6 = arith.constant 0 : index
    %c0_7 = arith.constant 0 : index
    %10 = vector.load %arg4[%c0_6, %c0_7] : memref<128x256xbf16, #tpu.memory_space<vmem>>, vector<128x256xbf16>
    %cst_8 = arith.constant dense<0.000000e+00> : vector<8x256xf32>
    %11 = tpu.matmul %9, %10, %cst_8 {dimension_numbers = #tpu.dot_dimension_numbers<[1], [0], [0], [1], [0, 0, 1, 1], [], []>} : vector<8x128xbf16>, vector<128x256xbf16>, vector<8x256xf32> -> vector<8x256xf32>
    %c0_9 = arith.constant 0 : index
    %c0_10 = arith.constant 0 : index
    %12 = vector.load %arg5[%c0_9, %c0_10] : memref<1x256xf32, #tpu.memory_space<vmem>>, vector<1x256xf32>
    %13 = vector.broadcast %12 : vector<1x256xf32> to vector<8x256xf32>
    %14 = arith.addf %11, %13 : vector<8x256xf32>
    %cst_11 = arith.constant 0.000000e+00 : f32
    %15 = vector.broadcast %cst_11 : f32 to vector<8x256xf32>
    %16 = arith.maximumf %14, %15 : vector<8x256xf32>
    %17 = arith.truncf %16 : vector<8x256xf32> to vector<8x256xbf16>
    %c0_12 = arith.constant 0 : index
    %c0_13 = arith.constant 0 : index
    %18 = vector.load %arg6[%c0_12, %c0_13] : memref<256x512xbf16, #tpu.memory_space<vmem>>, vector<256x512xbf16>
    %cst_14 = arith.constant dense<0.000000e+00> : vector<8x512xf32>
    %19 = tpu.matmul %17, %18, %cst_14 {dimension_numbers = #tpu.dot_dimension_numbers<[1], [0], [0], [1], [0, 0, 1, 1], [], []>} : vector<8x256xbf16>, vector<256x512xbf16>, vector<8x512xf32> -> vector<8x512xf32>
    %c0_15 = arith.constant 0 : index
    %c0_16 = arith.constant 0 : index
    %20 = vector.load %arg7[%c0_15, %c0_16] : memref<1x512xf32, #tpu.memory_space<vmem>>, vector<1x512xf32>
    %21 = vector.broadcast %20 : vector<1x512xf32> to vector<8x512xf32>
    %22 = arith.addf %19, %21 : vector<8x512xf32>
    %cst_17 = arith.constant 0.000000e+00 : f32
    %23 = vector.broadcast %cst_17 : f32 to vector<8x512xf32>
    %24 = arith.maximumf %22, %23 : vector<8x512xf32>
    %25 = arith.truncf %24 : vector<8x512xf32> to vector<8x512xbf16>
    %c0_18 = arith.constant 0 : index
    %c0_19 = arith.constant 0 : index
    %26 = vector.load %arg8[%c0_18, %c0_19] : memref<512x128xbf16, #tpu.memory_space<vmem>>, vector<512x128xbf16>
    %cst_20 = arith.constant dense<0.000000e+00> : vector<8x128xf32>
    %27 = tpu.matmul %25, %26, %cst_20 {dimension_numbers = #tpu.dot_dimension_numbers<[1], [0], [0], [1], [0, 0, 1, 1], [], []>} : vector<8x512xbf16>, vector<512x128xbf16>, vector<8x128xf32> -> vector<8x128xf32>
    %c0_21 = arith.constant 0 : index
    %c0_22 = arith.constant 0 : index
    %28 = vector.load %arg9[%c0_21, %c0_22] : memref<1x128xf32, #tpu.memory_space<vmem>>, vector<1x128xf32>
    %29 = vector.broadcast %28 : vector<1x128xf32> to vector<8x128xf32>
    %30 = arith.addf %27, %29 : vector<8x128xf32>
    %c0_23 = arith.constant 0 : index
    %c0_24 = arith.constant 0 : index
    %31 = vector.load %arg10[%c0_23, %c0_24] : memref<8x128xf32, #tpu.memory_space<vmem>>, vector<8x128xf32>
    tpu.vector_store %arg10[%c0_23, %c0_24], %30 {strides = array<i32>} : memref<8x128xf32, #tpu.memory_space<vmem>>, vector<8x128xf32>,
    return
  }
  func.func @transform_0(%arg0: i32) -> (i32, i32) {
    %c0_i32 = arith.constant 0 : i32
    %c0_i32_0 = arith.constant 0 : i32
    return %arg0, %c0_i32 : i32, i32
  }
  func.func @transform_1(%arg0: i32) -> (i32, i32) {
    %c0_i32 = arith.constant 0 : i32
    %c0_i32_0 = arith.constant 0 : i32
    %c0_i32_1 = arith.constant 0 : i32
    return %c0_i32, %c0_i32_0 : i32, i32
  }
  func.func @transform_2(%arg0: i32) -> (i32, i32) {
    %c0_i32 = arith.constant 0 : i32
    %c0_i32_0 = arith.constant 0 : i32
    %c0_i32_1 = arith.constant 0 : i32
    return %c0_i32, %c0_i32_0 : i32, i32
  }
  func.func @transform_3(%arg0: i32) -> (i32, i32) {
    %c0_i32 = arith.constant 0 : i32
    %c0_i32_0 = arith.constant 0 : i32
    %c0_i32_1 = arith.constant 0 : i32
    return %c0_i32, %c0_i32_0 : i32, i32
  }
  func.func @transform_4(%arg0: i32) -> (i32, i32) {
    %c0_i32 = arith.constant 0 : i32
    %c0_i32_0 = arith.constant 0 : i32
    %c0_i32_1 = arith.constant 0 : i32
    return %c0_i32, %c0_i32_0 : i32, i32
  }
  func.func @transform_5(%arg0: i32) -> (i32, i32) {
    %c0_i32 = arith.constant 0 : i32
    %c0_i32_0 = arith.constant 0 : i32
    %c0_i32_1 = arith.constant 0 : i32
    return %c0_i32, %c0_i32_0 : i32, i32
  }
  func.func @transform_6(%arg0: i32) -> (i32, i32) {
    %c0_i32 = arith.constant 0 : i32
    %c0_i32_0 = arith.constant 0 : i32
    %c0_i32_1 = arith.constant 0 : i32
    return %c0_i32, %c0_i32_0 : i32, i32
  }
  func.func @transform_7(%arg0: i32) -> (i32, i32) {
    %c0_i32 = arith.constant 0 : i32
    %c0_i32_0 = arith.constant 0 : i32
    %c0_i32_1 = arith.constant 0 : i32
    return %c0_i32, %c0_i32_0 : i32, i32
  }
  func.func @transform_8(%arg0: i32) -> (i32, i32) {
    %c0_i32 = arith.constant 0 : i32
    %c0_i32_0 = arith.constant 0 : i32
    %c0_i32_1 = arith.constant 0 : i32
    return %c0_i32, %c0_i32_0 : i32, i32
  }
  func.func @transform_9(%arg0: i32) -> (i32, i32) {
    %c0_i32 = arith.constant 0 : i32
    %c0_i32_0 = arith.constant 0 : i32
    return %arg0, %c0_i32 : i32, i32
  }
}

</mosaic_0001>

<bundles_post_ra>
// kernel: tpu_custom_call.1
= control target key start
LH: loop header
LB: loop body
LE: loop exit
PB: predicated region body
PF: predicated region fallthrough
CT: control target
= control target key end

     0   :  { %14 = vsyncpa [#allocation3], 0  ;;  %s1838_s0 = inlined_call_operand.hbm [shape: f32[8,32], index: 0, kind: input, shape index: {}]   ;;  %s1839_s1 = inlined_call_operand.hbm [shape: bf16[32,128], index: 1, kind: input, shape index: {}]   ;;  %s1840_s2 = inlined_call_operand.vmem [shape: f32[1,128], index: 2, kind: input, shape index: {}]   ;;  %s1841_s3 = inlined_call_operand.hbm [shape: bf16[128,256], index: 3, kind: input, shape index: {}]   ;;  %s1842_s4 = inlined_call_operand.vmem [shape: f32[1,256], index: 4, kind: input, shape index: {}]   ;;  %s1843_s5 = inlined_call_operand.hbm [shape: bf16[256,512], index: 5, kind: input, shape index: {}]   ;;  %s1844_s6 = inlined_call_operand.vmem [shape: f32[1,512], index: 6, kind: input, shape index: {}]   ;;  %s1845_s7 = inlined_call_operand.hbm [shape: bf16[512,128], index: 7, kind: input, shape index: {}]   ;;  %s1846_s8 = inlined_call_operand.vmem [shape: f32[1,128], index: 8, kind: input, shape index: {}]   ;;  %s1847_s9 = inlined_call_operand.hbm [shape: f32[8,128], index: 9, kind: output, shape index: {}]  }
   0x1   :  { %15 = vsyncpa [#allocation6], 0 }
   0x2   :  { %16 = vsyncpa [#allocation9], 0 }
   0x3   :  { %17 = vsyncpa [#allocation4], 0  ;;  %s1662_s30 = smov [#allocation5]   ;;  %s1522_s13 = scalar_lea.hbm %s1839_s1, 256 }
   0x4   :  { %s33_s10 = sshll.u32 %s1662_s30, 4  ;;  %p1523_p0 = scmp.ne.s32.totalorder %s1839_s1, %s1522_s13  ;;  %s34_s10 = int_to_ptr.vmem [resolvable:$true] %s33_s10 }
   0x5   :  { %p1526_p1 = scmp.lt.u32.totalorder %s1522_s13, %s1839_s1 }
   0x7   :  { %p1528_p2 = pnand %p1526_p1, %p1523_p0 }
   0x9   :  { %1531 = shalt.err (!%p1528_p2)
}
   0xa   :  { %s1532_s18 = scalar_lea.vmem %s34_s10, 256  ;;  %p1537_p4 = scmp.lt.s32.totalorder %s34_s10, %s34_s10 }
   0xb   :  { %p1533_p3 = scmp.ne.s32.totalorder %s34_s10, %s1532_s18  ;;  %p1538_p5 = scmp.lt.s32.totalorder %s1532_s18, %s1532_s18 }
   0xd   :  { %p1539_p6 = por %p1538_p5, %p1537_p4 }
   0xf   :  { %p1540_p7 = pnand %p1539_p6, %p1533_p3 }
  0x11   :  { %1543 = shalt.err (!%p1540_p7)
}
  0x12   :  { %s1663_s19 = smov 64   ;;  %s1664_s20 = smov 4  }
  0x13   :  { %39 = dma.hbm_to_vmem [thread:$0]  %s1839_s1, 256, %s34_s10, [#allocation6], %s1663_s19, %s1663_s19, %s1664_s20  }
  0x14   :  { %s1665_s23 = smov [#allocation8]   ;;  %s1544_s27 = scalar_lea.hbm %s1843_s5, 8192 }
  0x15   :  { %s61_s24 = sshll.u32 %s1665_s23, 4  ;;  %p1545_p8 = scmp.ne.s32.totalorder %s1843_s5, %s1544_s27  ;;  %s62_s24 = int_to_ptr.vmem [resolvable:$true] %s61_s24 }
  0x16   :  { %p1548_p9 = scmp.lt.u32.totalorder %s1544_s27, %s1843_s5 }
  0x18   :  { %p1550_p10 = pnand %p1548_p9, %p1545_p8 }
  0x1a   :  { %1553 = shalt.err (!%p1550_p10)
}
  0x1b   :  { %s1554_s12 = scalar_lea.vmem %s62_s24, 8192  ;;  %p1559_p12 = scmp.lt.s32.totalorder %s62_s24, %s62_s24 }
  0x1c   :  { %p1555_p11 = scmp.ne.s32.totalorder %s62_s24, %s1554_s12  ;;  %p1560_p13 = scmp.lt.s32.totalorder %s1554_s12, %s1554_s12 }
  0x1e   :  { %p1561_p0 = por %p1560_p13, %p1559_p12 }
  0x20   :  { %p1562_p1 = pnand %p1561_p0, %p1555_p11 }
  0x22   :  { %1565 = shalt.err (!%p1562_p1)
}
  0x23   :  { %s1666_s1 = smov 256   ;;  %s1667_s10 = smov 16  }
  0x24   :  { %67 = dma.hbm_to_vmem [thread:$0]  %s1843_s5, 8192, %s62_s24, [#allocation9], %s1666_s1, %s1666_s1, %s1667_s10  }
  0x25   :  { %s1668_s15 = smov [#allocation2]   ;;  %s1669_s17 = smov [#allocation7]  }
  0x26   :  { %s24_s16 = sshll.u32 %s1668_s15, 4  ;;  %s47_s18 = sshll.u32 %s1669_s17, 4  ;;  %s25_s16 = int_to_ptr.vmem [resolvable:$true] %s24_s16  ;;  %s1754_s18 = int_to_ptr.vmem [resolvable:$true] %s47_s18 }
  0x27   :  { %s1566_s23 = scalar_lea.hbm %s1838_s0, 128 }
  0x28   :  { %p1567_p2 = scmp.ne.s32.totalorder %s1838_s0, %s1566_s23  ;;  %p1570_p3 = scmp.lt.u32.totalorder %s1566_s23, %s1838_s0 }
  0x2a   :  { %p1572_p4 = pnand %p1570_p3, %p1567_p2 }
  0x2c   :  { %1575 = shalt.err (!%p1572_p4)
}
  0x2d   :  { %s1576_s5 = scalar_lea.vmem %s25_s16, 128  ;;  %p1581_p6 = scmp.lt.s32.totalorder %s25_s16, %s25_s16 }
  0x2e   :  { %p1577_p5 = scmp.ne.s32.totalorder %s25_s16, %s1576_s5  ;;  %p1582_p7 = scmp.lt.s32.totalorder %s1576_s5, %s1576_s5 }
  0x30   :  { %p1583_p8 = por %p1582_p7, %p1581_p6 }
  0x32   :  { %p1584_p9 = pnand %p1583_p8, %p1577_p5 }
  0x34   :  { %1587 = shalt.err (!%p1584_p9)
}
  0x35   :  { %27 = dma.hbm_to_vmem [thread:$0]  %s1838_s0, 128, %s25_s16, [#allocation3]  }
  0x36   :  { %s1588_s12 = scalar_lea.hbm %s1841_s3, 2048 }
  0x37   :  { %p1589_p10 = scmp.ne.s32.totalorder %s1841_s3, %s1588_s12  ;;  %p1592_p11 = scmp.lt.u32.totalorder %s1588_s12, %s1841_s3 }
  0x39   :  { %p1594_p12 = pnand %p1592_p11, %p1589_p10 }
  0x3b   :  { %1597 = shalt.err (!%p1594_p12)
}
  0x3c   :  { %s1598_s15 = scalar_lea.vmem %s1754_s18, 2048  ;;  %p1603_p0 = scmp.lt.s32.totalorder %s1754_s18, %s1754_s18 }
  0x3d   :  { %p1599_p13 = scmp.ne.s32.totalorder %s1754_s18, %s1598_s15  ;;  %p1604_p1 = scmp.lt.s32.totalorder %s1598_s15, %s1598_s15 }
  0x3f   :  { %p1605_p2 = por %p1604_p1, %p1603_p0 }
  0x41   :  { %p1606_p3 = pnand %p1605_p2, %p1599_p13 }
  0x43   :  { %1609 = shalt.err (!%p1606_p3)
}
  0x44   :  { %s1670_s0 = smov 128   ;;  %s1671_s16 = smov 8  }
  0x45   :  { %53 = dma.hbm_to_vmem [thread:$0]  %s1841_s3, 2048, %s1754_s18, [#allocation6], %s1670_s0, %s1670_s0, %s1671_s16  }
  0x46   :  { %s1672_s22 = smov [#allocation10]   ;;  %s1610_s27 = scalar_lea.hbm %s1845_s7, 4096 }
  0x47   :  { %s75_s23 = sshll.u32 %s1672_s22, 4  ;;  %p1611_p4 = scmp.ne.s32.totalorder %s1845_s7, %s1610_s27  ;;  %s76_s23 = int_to_ptr.vmem [resolvable:$true] %s75_s23 }
  0x48   :  { %p1614_p5 = scmp.lt.u32.totalorder %s1610_s27, %s1845_s7 }
  0x4a   :  { %p1616_p6 = pnand %p1614_p5, %p1611_p4 }
  0x4c   :  { %1619 = shalt.err (!%p1616_p6)
}
  0x4d   :  { %s1620_s30 = scalar_lea.vmem %s76_s23, 4096  ;;  %p1625_p8 = scmp.lt.s32.totalorder %s76_s23, %s76_s23 }
  0x4e   :  { %p1621_p7 = scmp.ne.s32.totalorder %s76_s23, %s1620_s30  ;;  %p1626_p9 = scmp.lt.s32.totalorder %s1620_s30, %s1620_s30 }
  0x50   :  { %p1627_p10 = por %p1626_p9, %p1625_p8 }
  0x52   :  { %p1628_p11 = pnand %p1627_p10, %p1621_p7 }
  0x54   :  { %1631 = shalt.err (!%p1628_p11)
}
  0x55   :  { %81 = dma.hbm_to_vmem [thread:$0]  %s1845_s7, 4096, %s76_s23, [#allocation9], %s1663_s19, %s1663_s19, %s1664_s20  }
  0x56   :  { %1654 = dma.done.wait [#allocation3], 128  }
  0x57   :  { %1655 = vsyncadd [#allocation3], 4294967168 }
  0x58   :  { %1656 = dma.done.wait [#allocation6], 2304  }
  0x59   :  { %1657 = vsyncadd [#allocation6], 4294964992 }
  0x5a   :  { %1658 = dma.done.wait [#allocation9], 12288  }
  0x5b   :  { %1659 = vsyncadd [#allocation9], 4294955008  ;;  %v1673_v0 = vmov 0.0   ;;  %vm1674_vm0 = vmmov 0   ;;  %v1368_v1 = vld [vmem:[#allocation5] sm:$0xff]   ;;  %v1369_v2 = vld [vmem:[#allocation5 + $0x8] sm:$0xff]  }
  0x5c   :  { %1345 = vmatprep.subr.bf16.mxu0 %v1673_v0  ;;  %1349 = vmatprep.mubr.msk.bf16.mxu0 %vm1674_vm0, %v1673_v0  ;;  %v100_v3 = vld [vmem:[#allocation2] sm:$0xff]  ;;  %v1373_v6 = vld [vmem:[#allocation7 + $0x14] ss:$8 sps:$4 sm:$0xff]   ;;  %vm125_vm1 = vcmask 261120   ;;  %v1375_v8 = vld [vmem:[#allocation7 + $0x10] ss:$8 sps:$4 sm:$0xff]  }
  0x5d   :  { %1346 = vmatpush3.bf16.msra.mxu0 %v1368_v1  ;;  %v1370_v4 = vld [vmem:[#allocation7 + $0x4] ss:$8 sps:$4 sm:$0xff]   ;;  %v1372_v5 = vld [vmem:[#allocation7] ss:$8 sps:$4 sm:$0xff]   ;;  %v101_v7 = vpack.c.bf16 %v100_v3, %v100_v3  ;;  %v1379_v11 = vld [vmem:[#allocation7 + $0x34] ss:$8 sps:$4 sm:$0xff]  }
  0x5e   :  { %1347 = vmatprep.subr.bf16.mxu0 %v1673_v0  ;;  %279 = vmatprep.subr.bf16.mxu1 %v1370_v4  ;;  %v1376_v9 = vld [vmem:[#allocation7 + $0x24] ss:$8 sps:$4 sm:$0xff]   ;;  %v1378_v10 = vld [vmem:[#allocation7 + $0x20] ss:$8 sps:$4 sm:$0xff]   ;;  %v1381_v12 = vld [vmem:[#allocation7 + $0x30] ss:$8 sps:$4 sm:$0xff]  }
  0x5f   :  { %280 = vmatpush1.bf16.msra.mxu1 %v1372_v5  ;;  %v1382_v13 = vld [vmem:[#allocation7 + $0x44] ss:$8 sps:$4 sm:$0xff]   ;;  %v1384_v14 = vld [vmem:[#allocation7 + $0x40] ss:$8 sps:$4 sm:$0xff]   ;;  %v1385_v15 = vld [vmem:[#allocation7 + $0x54] ss:$8 sps:$4 sm:$0xff]  }
  0x60   :  { %281 = vmatprep.subr.bf16.mxu1 %v1373_v6  ;;  %v1387_v16 = vld [vmem:[#allocation7 + $0x50] ss:$8 sps:$4 sm:$0xff]   ;;  %v1388_v17 = vld [vmem:[#allocation7 + $0x64] ss:$8 sps:$4 sm:$0xff]   ;;  %v1390_v18 = vld [vmem:[#allocation7 + $0x60] ss:$8 sps:$4 sm:$0xff]  }
  0x61   :  { %1348 = vmatpush3.bf16.msra.mxu0 %v1369_v2  ;;  %v1391_v19 = vld [vmem:[#allocation7 + $0x74] ss:$8 sps:$4 sm:$0xff]   ;;  %v1393_v20 = vld [vmem:[#allocation7 + $0x70] ss:$8 sps:$4 sm:$0xff]   ;;  %v1675_v21 = vmov 0   ;;  %s1676_s1 = smov [#allocation11]  }
  0x62   :  { %311 = vmatprep.mubr.bf16.mxu1 %v1675_v21  ;;  %v1394_v22 = vld [vmem:[#allocation8] ss:$16 sps:$4 sm:$0xff]   ;;  %v1396_v23 = vld [vmem:[#allocation8 + $0x4] ss:$16 sps:$4 sm:$0xff]   ;;  %v1399_v24 = vld [vmem:[#allocation8 + $0xc] ss:$16 sps:$4 sm:$0xff]  }
  0x63   :  { %282 = vmatpush1.bf16.msra.mxu1 %v1375_v8  ;;  %v1402_v25 = vld [vmem:[#allocation8 + $0x24] ss:$16 sps:$4 sm:$0xff]   ;;  %730 = vmatprep.subr.bf16.mxu0 %v1396_v23  ;;  %v1400_v26 = vld [vmem:[#allocation8 + $0x20] ss:$16 sps:$4 sm:$0xff]   ;;  %v1181_v51 = vld [vmem:[%s1840_s2] ss:$0 sm:$0xff] }
  0x64   :  { %1350 = vmatmul.mubr.msk.bf16.vlgmr.msra.gmra.mrb[0].mxu0 %vm125_vm1, %v101_v7  ;;  %283 = vmatprep.subr.bf16.mxu1 %v1376_v9  ;;  %v1408_v27 = vld [vmem:[#allocation8 + $0x44] ss:$16 sps:$4 sm:$0xff]   ;;  %v1406_v28 = vld [vmem:[#allocation8 + $0x40] ss:$16 sps:$4 sm:$0xff]   ;;  %v1397_v58 = vld [vmem:[#allocation8 + $0x8] ss:$16 sps:$4 sm:$0xff]  }
  0x65   :  { %731 = vmatpush1.bf16.msra.mxu0 %v1394_v22  ;;  %v1414_v29 = vld [vmem:[#allocation8 + $0x64] ss:$16 sps:$4 sm:$0xff]   ;;  %v1412_v30 = vld [vmem:[#allocation8 + $0x60] ss:$16 sps:$4 sm:$0xff]   ;;  %v1405_v60 = vld [vmem:[#allocation8 + $0x2c] ss:$16 sps:$4 sm:$0xff]  }
  0x66   :  { %732 = vmatprep.subr.bf16.mxu0 %v1402_v25  ;;  %v1420_v31 = vld [vmem:[#allocation8 + $0x84] ss:$16 sps:$4 sm:$0xff]   ;;  %v1418_v32 = vld [vmem:[#allocation8 + $0x80] ss:$16 sps:$4 sm:$0xff]   ;;  %v1403_v61 = vld [vmem:[#allocation8 + $0x28] ss:$16 sps:$4 sm:$0xff]  }
  0x67   :  { %284 = vmatpush1.bf16.msra.mxu1 %v1378_v10  ;;  %v1426_v33 = vld [vmem:[#allocation8 + $0xa4] ss:$16 sps:$4 sm:$0xff]   ;;  %v1424_v34 = vld [vmem:[#allocation8 + $0xa0] ss:$16 sps:$4 sm:$0xff]   ;;  %v1411_v62 = vld [vmem:[#allocation8 + $0x4c] ss:$16 sps:$4 sm:$0xff]  }
  0x68   :  { %285 = vmatprep.subr.bf16.mxu1 %v1379_v11  ;;  %v1432_v35 = vld [vmem:[#allocation8 + $0xc4] ss:$16 sps:$4 sm:$0xff]   ;;  %v1430_v36 = vld [vmem:[#allocation8 + $0xc0] ss:$16 sps:$4 sm:$0xff]   ;;  %v1409_v63 = vld [vmem:[#allocation8 + $0x48] ss:$16 sps:$4 sm:$0xff]  }
  0x69   :  { %733 = vmatpush1.bf16.msra.mxu0 %v1400_v26  ;;  %v1438_v37 = vld [vmem:[#allocation8 + $0xe4] ss:$16 sps:$4 sm:$0xff]   ;;  %v1436_v38 = vld [vmem:[#allocation8 + $0xe0] ss:$16 sps:$4 sm:$0xff]   ;;  %v1417_v0 = vld [vmem:[#allocation8 + $0x6c] ss:$16 sps:$4 sm:$0xff]  }
  0x6a   :  { %734 = vmatprep.subr.bf16.mxu0 %v1408_v27  ;;  %v1444_v39 = vld [vmem:[#allocation8 + $0x104] ss:$16 sps:$4 sm:$0xff]   ;;  %v1442_v40 = vld [vmem:[#allocation8 + $0x100] ss:$16 sps:$4 sm:$0xff]   ;;  %v1415_v1 = vld [vmem:[#allocation8 + $0x68] ss:$16 sps:$4 sm:$0xff]  }
  0x6b   :  { %286 = vmatpush1.bf16.msra.mxu1 %v1381_v12  ;;  %v1450_v41 = vld [vmem:[#allocation8 + $0x124] ss:$16 sps:$4 sm:$0xff]   ;;  %v1448_v42 = vld [vmem:[#allocation8 + $0x120] ss:$16 sps:$4 sm:$0xff]   ;;  %v1423_v2 = vld [vmem:[#allocation8 + $0x8c] ss:$16 sps:$4 sm:$0xff]  }
  0x6c   :  { %287 = vmatprep.subr.bf16.mxu1 %v1382_v13  ;;  %v1456_v43 = vld [vmem:[#allocation8 + $0x144] ss:$16 sps:$4 sm:$0xff]   ;;  %v1454_v44 = vld [vmem:[#allocation8 + $0x140] ss:$16 sps:$4 sm:$0xff]   ;;  %v1421_v3 = vld [vmem:[#allocation8 + $0x88] ss:$16 sps:$4 sm:$0xff]  }
  0x6d   :  { %735 = vmatpush1.bf16.msra.mxu0 %v1406_v28  ;;  %v1462_v45 = vld [vmem:[#allocation8 + $0x164] ss:$16 sps:$4 sm:$0xff]   ;;  %v1460_v46 = vld [vmem:[#allocation8 + $0x160] ss:$16 sps:$4 sm:$0xff]   ;;  %v1429_v4 = vld [vmem:[#allocation8 + $0xac] ss:$16 sps:$4 sm:$0xff]  }
  0x6e   :  { %736 = vmatprep.subr.bf16.mxu0 %v1414_v29  ;;  %v1468_v47 = vld [vmem:[#allocation8 + $0x184] ss:$16 sps:$4 sm:$0xff]   ;;  %v1466_v48 = vld [vmem:[#allocation8 + $0x180] ss:$16 sps:$4 sm:$0xff]   ;;  %v1427_v5 = vld [vmem:[#allocation8 + $0xa8] ss:$16 sps:$4 sm:$0xff]  }
  0x6f   :  { %288 = vmatpush1.bf16.msra.mxu1 %v1384_v14  ;;  %v1474_v49 = vld [vmem:[#allocation8 + $0x1a4] ss:$16 sps:$4 sm:$0xff]   ;;  %v1472_v50 = vld [vmem:[#allocation8 + $0x1a0] ss:$16 sps:$4 sm:$0xff]   ;;  %v1435_v6 = vld [vmem:[#allocation8 + $0xcc] ss:$16 sps:$4 sm:$0xff]  }
  0x70   :  { %289 = vmatprep.subr.bf16.mxu1 %v1385_v15  ;;  %v1433_v7 = vld [vmem:[#allocation8 + $0xc8] ss:$16 sps:$4 sm:$0xff]   ;;  %v1441_v8 = vld [vmem:[#allocation8 + $0xec] ss:$16 sps:$4 sm:$0xff]   ;;  %v1480_v22 = vld [vmem:[#allocation8 + $0x1c4] ss:$16 sps:$4 sm:$0xff]  }
  0x71   :  { %737 = vmatpush1.bf16.msra.mxu0 %v1412_v30  ;;  %v1439_v9 = vld [vmem:[#allocation8 + $0xe8] ss:$16 sps:$4 sm:$0xff]   ;;  %v1447_v10 = vld [vmem:[#allocation8 + $0x10c] ss:$16 sps:$4 sm:$0xff]   ;;  %v1486_v26 = vld [vmem:[#allocation8 + $0x1e4] ss:$16 sps:$4 sm:$0xff]  }
  0x72   :  { %738 = vmatprep.subr.bf16.mxu0 %v1420_v31  ;;  %v1445_v11 = vld [vmem:[#allocation8 + $0x108] ss:$16 sps:$4 sm:$0xff]   ;;  %v1453_v12 = vld [vmem:[#allocation8 + $0x12c] ss:$16 sps:$4 sm:$0xff]   ;;  %v1484_v28 = vld [vmem:[#allocation8 + $0x1e0] ss:$16 sps:$4 sm:$0xff]  }
  0x73   :  { %290 = vmatpush1.bf16.msra.mxu1 %v1387_v16  ;;  %v1451_v13 = vld [vmem:[#allocation8 + $0x128] ss:$16 sps:$4 sm:$0xff]   ;;  %v1459_v14 = vld [vmem:[#allocation8 + $0x14c] ss:$16 sps:$4 sm:$0xff]   ;;  %v1490_v30 = vld [vmem:[#allocation10 + $0x40] sm:$0xff]   ;;  %s1170_s10 = sshll.u32 %s1676_s1, 4  ;;  %s1171_s10 = int_to_ptr.vmem [resolvable:$true] %s1170_s10 }
  0x74   :  { %291 = vmatprep.subr.bf16.mxu1 %v1388_v17  ;;  %v1457_v15 = vld [vmem:[#allocation8 + $0x148] ss:$16 sps:$4 sm:$0xff]   ;;  %v1465_v16 = vld [vmem:[#allocation8 + $0x16c] ss:$16 sps:$4 sm:$0xff]   ;;  %v1491_v31 = vld [vmem:[#allocation10 + $0xc0] sm:$0xff]   ;;  %s1632_s13 = scalar_lea.vmem %s1171_s10, 128  ;;  %p1637_p13 = scmp.lt.s32.totalorder %s1171_s10, %s1171_s10 }
  0x75   :  { %739 = vmatpush1.bf16.msra.mxu0 %v1418_v32  ;;  %v1463_v17 = vld [vmem:[#allocation8 + $0x168] ss:$16 sps:$4 sm:$0xff]   ;;  %v1483_v23 = vld [vmem:[#allocation8 + $0x1cc] ss:$16 sps:$4 sm:$0xff]   ;;  %v189_v32 = vlaneseq  ;;  %p1633_p12 = scmp.ne.s32.totalorder %s1171_s10, %s1632_s13  ;;  %p1638_p0 = scmp.lt.s32.totalorder %s1632_s13, %s1632_s13 }
  0x76   :  { %740 = vmatprep.subr.bf16.mxu0 %v1426_v33  ;;  %v1475_v21 = vld [vmem:[#allocation8 + $0x1a8] ss:$16 sps:$4 sm:$0xff]   ;;  %v1489_v27 = vld [vmem:[#allocation8 + $0x1ec] ss:$16 sps:$4 sm:$0xff]  }
  0x77   :  { %292 = vmatpush1.bf16.msra.mxu1 %v1390_v18  ;;  %v1471_v18 = vld [vmem:[#allocation8 + $0x18c] ss:$16 sps:$4 sm:$0xff]   ;;  %v1481_v25 = vld [vmem:[#allocation8 + $0x1c8] ss:$16 sps:$4 sm:$0xff]   ;;  %v1803_v33 = vshrl.u32 %v189_v32, 7  ;;  %p1639_p1 = por %p1638_p0, %p1637_p13 }
  0x78   :  { %293 = vmatprep.subr.bf16.mxu1 %v1391_v19  ;;  %v1469_v19 = vld [vmem:[#allocation8 + $0x188] ss:$16 sps:$4 sm:$0xff]  }
  0x79   :  { %741 = vmatpush1.bf16.msra.mxu0 %v1424_v34  ;;  %v1487_v29 = vld [vmem:[#allocation8 + $0x1e8] ss:$16 sps:$4 sm:$0xff]   ;;  %v191_v34 = vsub.s32 0, %v1803_v33  ;;  %p1640_p2 = pnand %p1639_p1, %p1633_p12 }
  0x7a   :  { %742 = vmatprep.subr.bf16.mxu0 %v1432_v35  ;;  %v187_v35 = vld [vmem:[%s1842_s4] sm:$0x3] }
  0x7b   :  { %294 = vmatpush1.bf16.msra.mxu1 %v1393_v20  ;;  %v1477_v20 = vld [vmem:[#allocation8 + $0x1ac] ss:$16 sps:$4 sm:$0xff]  }
  0x7c   :  { %771 = vmatprep.subr.bf16.mxu1 %v1399_v24  ;;  %v1478_v24 = vld [vmem:[#allocation8 + $0x1c0] ss:$16 sps:$4 sm:$0xff]  }
  0x7d   :  { %743 = vmatpush1.bf16.msra.mxu0 %v1430_v36  ;;  %v195_v36 = vsub.s32 1, %v1803_v33 }
  0x7e   :  { %744 = vmatprep.subr.bf16.mxu0 %v1438_v37  ;;  %v192_v37 = vrot.slane %v187_v35, %v191_v34 }
  0x81   :  { %745 = vmatpush1.bf16.msra.mxu0 %v1436_v38  ;;  %v196_v38 = vrot.slane %v187_v35, %v195_v36 }
  0x82   :  { %746 = vmatprep.subr.bf16.mxu0 %v1444_v39 }
  0x85   :  { %747 = vmatpush1.bf16.msra.mxu0 %v1442_v40 }
  0x86   :  { %748 = vmatprep.subr.bf16.mxu0 %v1450_v41 }
  0x89   :  { %749 = vmatpush1.bf16.msra.mxu0 %v1448_v42 }
  0x8a   :  { %750 = vmatprep.subr.bf16.mxu0 %v1456_v43 }
  0x8d   :  { %751 = vmatpush1.bf16.msra.mxu0 %v1454_v44 }
  0x8e   :  { %752 = vmatprep.subr.bf16.mxu0 %v1462_v45 }
  0x91   :  { %753 = vmatpush1.bf16.msra.mxu0 %v1460_v46 }
  0x92   :  { %754 = vmatprep.subr.bf16.mxu0 %v1468_v47 }
  0x95   :  { %755 = vmatpush1.bf16.msra.mxu0 %v1466_v48  ;;  %v1492_v48 = vld [vmem:[#allocation10] sm:$0xff]  }
  0x96   :  { %756 = vmatprep.subr.bf16.mxu0 %v1474_v49  ;;  %v1493_v49 = vld [vmem:[#allocation10 + $0x80] sm:$0xff]  }
  0x99   :  { %757 = vmatpush1.bf16.msra.mxu0 %v1472_v50 }
  0x9a   :  { %758 = vmatprep.subr.bf16.mxu0 %v1480_v22 }
  0x9d   :  { %759 = vmatpush1.bf16.msra.mxu0 %v1478_v24 }
  0x9e   :  { %760 = vmatprep.subr.bf16.mxu0 %v1486_v26 }
  0xa1   :  { %761 = vmatpush1.bf16.msra.mxu0 %v1484_v28 }
  0xa2   :  { %1301 = vmatprep.subr.bf16.mxu0 %v1490_v30 }
 0x137   :  { %v163_v52 = vpop.f32.mrb[0].mxu0 }
 0x138   :  { %v164_v53 = vadd.f32 %v1181_v51, %v163_v52  ;;  %v1351_v54 = vpop.f32.mrb[1].mxu0  ;;  %v1494_v51 = vld [vmem:[#allocation10 + $0x48] sm:$0xff]  }
 0x139   :  { %v166_v55 = vpop.f32.mrb[2].mxu0  ;;  %v1495_v52 = vld [vmem:[#allocation10 + $0xc8] sm:$0xff]  }
 0x13a   :  { %v169_v56 = vmax.f32 %v164_v53, 0.0  ;;  %v1352_v57 = vpop.f32.mrb[3].mxu0  ;;  %v1496_v53 = vld [vmem:[#allocation10 + $0x8] sm:$0xff]   ;;  %v1498_v55 = vld [vmem:[#allocation10 + $0x50] sm:$0xff]  }
 0x13b   :  { %v1497_v54 = vld [vmem:[#allocation10 + $0x88] sm:$0xff]   ;;  %v1500_v57 = vld [vmem:[#allocation10 + $0x10] sm:$0xff]  }
 0x13c   :  { %v170_v59 = vpack.c.bf16 %v169_v56, %v169_v56  ;;  %v1499_v56 = vld [vmem:[#allocation10 + $0xd0] sm:$0xff]  }
 0x13e   :  { %312 = vmatmul.mubr.bf16.vlgmr.msra.gmra.mrb[0].mxu1 %v170_v59  ;;  %v1502_v59 = vld [vmem:[#allocation10 + $0x58] sm:$0xff]  }
 0x13f   :  { %772 = vmatpush1.bf16.msra.mxu1 %v1397_v58  ;;  %v1501_v58 = vld [vmem:[#allocation10 + $0x90] sm:$0xff]  }
 0x140   :  { %773 = vmatprep.subr.bf16.mxu1 %v1405_v60  ;;  %v1503_v60 = vld [vmem:[#allocation10 + $0xd8] sm:$0xff]  }
 0x143   :  { %774 = vmatpush1.bf16.msra.mxu1 %v1403_v61  ;;  %v1504_v61 = vld [vmem:[#allocation10 + $0x18] sm:$0xff]  }
 0x144   :  { %775 = vmatprep.subr.bf16.mxu1 %v1411_v62  ;;  %v1505_v62 = vld [vmem:[#allocation10 + $0x98] sm:$0xff]  }
 0x147   :  { %776 = vmatpush1.bf16.msra.mxu1 %v1409_v63  ;;  %v1506_v63 = vld [vmem:[#allocation10 + $0x60] sm:$0xff]  }
 0x148   :  { %777 = vmatprep.subr.bf16.mxu1 %v1417_v0  ;;  %v1507_v0 = vld [vmem:[#allocation10 + $0xe0] sm:$0xff]  }
 0x14b   :  { %778 = vmatpush1.bf16.msra.mxu1 %v1415_v1  ;;  %v1508_v1 = vld [vmem:[#allocation10 + $0x20] sm:$0xff]  }
 0x14c   :  { %779 = vmatprep.subr.bf16.mxu1 %v1423_v2  ;;  %v1509_v2 = vld [vmem:[#allocation10 + $0xa0] sm:$0xff]  }
 0x14f   :  { %780 = vmatpush1.bf16.msra.mxu1 %v1421_v3  ;;  %v1510_v3 = vld [vmem:[#allocation10 + $0x68] sm:$0xff]  }
 0x150   :  { %781 = vmatprep.subr.bf16.mxu1 %v1429_v4  ;;  %v1511_v4 = vld [vmem:[#allocation10 + $0xe8] sm:$0xff]  }
 0x153   :  { %782 = vmatpush1.bf16.msra.mxu1 %v1427_v5  ;;  %v1512_v5 = vld [vmem:[#allocation10 + $0x28] sm:$0xff]  }
 0x154   :  { %783 = vmatprep.subr.bf16.mxu1 %v1435_v6  ;;  %v1513_v6 = vld [vmem:[#allocation10 + $0xa8] sm:$0xff]  }
 0x157   :  { %784 = vmatpush1.bf16.msra.mxu1 %v1433_v7  ;;  %v1514_v7 = vld [vmem:[#allocation10 + $0x70] sm:$0xff]  }
 0x158   :  { %785 = vmatprep.subr.bf16.mxu1 %v1441_v8  ;;  %v1515_v8 = vld [vmem:[#allocation10 + $0xf0] sm:$0xff]  }
 0x15b   :  { %786 = vmatpush1.bf16.msra.mxu1 %v1439_v9  ;;  %v1516_v9 = vld [vmem:[#allocation10 + $0x30] sm:$0xff]  }
 0x15c   :  { %787 = vmatprep.subr.bf16.mxu1 %v1447_v10  ;;  %v1517_v10 = vld [vmem:[#allocation10 + $0xb0] sm:$0xff]  }
 0x15f   :  { %788 = vmatpush1.bf16.msra.mxu1 %v1445_v11  ;;  %v1518_v11 = vld [vmem:[#allocation10 + $0x78] sm:$0xff]  }
 0x160   :  { %789 = vmatprep.subr.bf16.mxu1 %v1453_v12  ;;  %v1519_v12 = vld [vmem:[#allocation10 + $0xf8] sm:$0xff]  }
 0x163   :  { %790 = vmatpush1.bf16.msra.mxu1 %v1451_v13  ;;  %v1520_v13 = vld [vmem:[#allocation10 + $0x38] sm:$0xff]  }
 0x164   :  { %791 = vmatprep.subr.bf16.mxu1 %v1459_v14  ;;  %v1521_v14 = vld [vmem:[#allocation10 + $0xb8] sm:$0xff]  }
 0x167   :  { %792 = vmatpush1.bf16.msra.mxu1 %v1457_v15  ;;  %v400_v15 = vsub.s32 2, %v1803_v33 }
 0x168   :  { %793 = vmatprep.subr.bf16.mxu1 %v1465_v16  ;;  %v388_v16 = vld [vmem:[%s1844_s6] sm:$0xf] }
 0x16b   :  { %794 = vmatpush1.bf16.msra.mxu1 %v1463_v17  ;;  %v404_v17 = vsub.s32 3, %v1803_v33 }
 0x16c   :  { %795 = vmatprep.subr.bf16.mxu1 %v1471_v18  ;;  %v393_v18 = vrot.slane %v388_v16, %v191_v34 }
 0x16f   :  { %796 = vmatpush1.bf16.msra.mxu1 %v1469_v19  ;;  %v401_v19 = vrot.slane %v388_v16, %v400_v15 }
 0x170   :  { %797 = vmatprep.subr.bf16.mxu1 %v1477_v20  ;;  %v397_v20 = vrot.slane %v388_v16, %v195_v36 }
 0x173   :  { %798 = vmatpush1.bf16.msra.mxu1 %v1475_v21  ;;  %v405_v21 = vrot.slane %v388_v16, %v404_v17 }
 0x174   :  { %799 = vmatprep.subr.bf16.mxu1 %v1483_v23 }
 0x177   :  { %800 = vmatpush1.bf16.msra.mxu1 %v1481_v25 }
 0x178   :  { %801 = vmatprep.subr.bf16.mxu1 %v1489_v27 }
 0x17b   :  { %802 = vmatpush1.bf16.msra.mxu1 %v1487_v29 }
 0x17c   :  { %1323 = vmatprep.subr.bf16.mxu1 %v1491_v31 }
 0x211   :  { %v313_v39 = vpop.f32.mrb[0].mxu1 }
 0x212   :  { %v314_v40 = vadd.f32 %v313_v39, %v192_v37  ;;  %v315_v41 = vpop.f32.mrb[1].mxu1 }
 0x213   :  { %v316_v42 = vadd.f32 %v315_v41, %v196_v38  ;;  %v317_v43 = vpop.f32.mrb[2].mxu1 }
 0x214   :  { %v320_v44 = vmax.f32 %v314_v40, 0.0  ;;  %v318_v45 = vpop.f32.mrb[3].mxu1 }
 0x215   :  { %v321_v46 = vmax.f32 %v316_v42, 0.0 }
 0x216   :  { %v322_v50 = vpack.c.bf16 %v320_v44, %v320_v44  ;;  %v1265_v44 = vld [vmem:[%s1846_s8] ss:$0 sm:$0xff] }
 0x217   :  { %v323_v47 = vpack.c.bf16 %v321_v46, %v321_v46 }
 0x219   :  { %762 = vmatprep.mubr.bf16.mxu0 %v323_v47  ;;  %803 = vmatprep.mubr.bf16.mxu1 %v323_v47 }
 0x21a   :  { %763 = vmatmul.mubr.bf16.vlgmr.msra.gmra.mrb[4].mxu0 %v322_v50  ;;  %804 = vmatmul.mubr.bf16.vlgmr.msra.gmra.mrb[4].mxu1 %v322_v50 }
 0x21b   :  { %1302 = vmatpush3.bf16.msra.mxu0 %v1492_v48  ;;  %1324 = vmatpush3.bf16.msra.mxu1 %v1493_v49 }
 0x21c   :  { %1303 = vmatprep.subr.bf16.mxu0 %v1494_v51  ;;  %1325 = vmatprep.subr.bf16.mxu1 %v1495_v52 }
 0x21f   :  { %1304 = vmatpush3.bf16.msra.mxu0 %v1496_v53  ;;  %1326 = vmatpush3.bf16.msra.mxu1 %v1497_v54 }
 0x220   :  { %1305 = vmatprep.subr.bf16.mxu0 %v1498_v55  ;;  %1327 = vmatprep.subr.bf16.mxu1 %v1499_v56 }
 0x223   :  { %1306 = vmatpush3.bf16.msra.mxu0 %v1500_v57  ;;  %1328 = vmatpush3.bf16.msra.mxu1 %v1501_v58 }
 0x224   :  { %1307 = vmatprep.subr.bf16.mxu0 %v1502_v59  ;;  %1329 = vmatprep.subr.bf16.mxu1 %v1503_v60 }
 0x227   :  { %1308 = vmatpush3.bf16.msra.mxu0 %v1504_v61  ;;  %1330 = vmatpush3.bf16.msra.mxu1 %v1505_v62 }
 0x228   :  { %1309 = vmatprep.subr.bf16.mxu0 %v1506_v63  ;;  %1331 = vmatprep.subr.bf16.mxu1 %v1507_v0 }
 0x22b   :  { %1310 = vmatpush3.bf16.msra.mxu0 %v1508_v1  ;;  %1332 = vmatpush3.bf16.msra.mxu1 %v1509_v2 }
 0x22c   :  { %1311 = vmatprep.subr.bf16.mxu0 %v1510_v3  ;;  %1333 = vmatprep.subr.bf16.mxu1 %v1511_v4 }
 0x22f   :  { %1312 = vmatpush3.bf16.msra.mxu0 %v1512_v5  ;;  %1334 = vmatpush3.bf16.msra.mxu1 %v1513_v6 }
 0x230   :  { %1313 = vmatprep.subr.bf16.mxu0 %v1514_v7  ;;  %1335 = vmatprep.subr.bf16.mxu1 %v1515_v8 }
 0x233   :  { %1314 = vmatpush3.bf16.msra.mxu0 %v1516_v9  ;;  %1336 = vmatpush3.bf16.msra.mxu1 %v1517_v10 }
 0x234   :  { %1315 = vmatprep.subr.bf16.mxu0 %v1518_v11  ;;  %1337 = vmatprep.subr.bf16.mxu1 %v1519_v12 }
 0x237   :  { %1316 = vmatpush3.bf16.msra.mxu0 %v1520_v13  ;;  %1338 = vmatpush3.bf16.msra.mxu1 %v1521_v14 }
 0x2ed   :  { %v764_v22 = vpop.f32.mrb[4].mxu0  ;;  %v805_v23 = vpop.f32.mrb[4].mxu1 }
 0x2ee   :  { %v765_v24 = vadd.f32 %v764_v22, %v393_v18  ;;  %v806_v25 = vadd.f32 %v805_v23, %v401_v19  ;;  %v766_v26 = vpop.f32.mrb[5].mxu0  ;;  %v807_v27 = vpop.f32.mrb[5].mxu1 }
 0x2ef   :  { %v767_v28 = vadd.f32 %v766_v26, %v397_v20  ;;  %v808_v29 = vadd.f32 %v807_v27, %v405_v21  ;;  %v768_v30 = vpop.f32.mrb[6].mxu0  ;;  %v809_v31 = vpop.f32.mrb[6].mxu1 }
 0x2f0   :  { %v812_v32 = vmax.f32 %v765_v24, 0.0  ;;  %v814_v35 = vmax.f32 %v806_v25, 0.0  ;;  %v769_v37 = vpop.f32.mrb[7].mxu0  ;;  %v810_v38 = vpop.f32.mrb[7].mxu1 }
 0x2f1   :  { %v813_v34 = vmax.f32 %v767_v28, 0.0  ;;  %v815_v39 = vmax.f32 %v808_v29, 0.0 }
 0x2f2   :  { %v816_v36 = vpack.c.bf16 %v812_v32, %v812_v32  ;;  %v818_v41 = vpack.c.bf16 %v814_v35, %v814_v35 }
 0x2f3   :  { %v817_v40 = vpack.c.bf16 %v813_v34, %v813_v34  ;;  %v819_v33 = vpack.c.bf16 %v815_v39, %v815_v39 }
 0x2f5   :  { %1115 = vmatprep.mubr.bf16.mxu0 %v817_v40  ;;  %1155 = vmatprep.mubr.bf16.mxu1 %v819_v33 }
 0x2f6   :  { %1116 = vmatmul.mubr.bf16.vlgmr.msra.gmra.mrb[8].mxu0 %v816_v36  ;;  %1156 = vmatmul.mubr.bf16.vlgmr.msra.gmra.mrb[8].mxu1 %v818_v41 }
 0x3c9   :  { %v1317_v42 = vpop.f32.mrb[8].mxu0  ;;  %v1339_v43 = vpop.f32.mrb[8].mxu1 }
 0x3ca   :  { %v1318_v45 = vpop.f32.mrb[9].mxu0  ;;  %v1340_v46 = vpop.f32.mrb[9].mxu1 }
 0x3cb   :  { %v1319_v47 = vadd.f32 %v1318_v45, %v1317_v42  ;;  %v1341_v48 = vadd.f32 %v1340_v46, %v1339_v43  ;;  %v1320_v49 = vpop.f32.mrb[10].mxu0  ;;  %v1342_v50 = vpop.f32.mrb[10].mxu1 }
 0x3cc   :  { %v1321_v51 = vpop.f32.mrb[11].mxu0  ;;  %v1343_v52 = vpop.f32.mrb[11].mxu1 }
 0x3cd   :  { %v1118_v53 = vadd.f32 %v1319_v47, %v1265_v44 }
 0x3cf   :  { %v1158_v54 = vadd.f32 %v1341_v48, %v1118_v53 }
 0x3d1   :  { %1163 = vst [vmem:[#allocation11] sm:$0xff] %v1158_v54 }
 0x3d2   :  { %1643 = shalt.err (!%p1640_p2)
}
 0x3d3   :  { %s1644_s15 = scalar_lea.hbm %s1847_s9, 128 }
 0x3d4   :  { %p1645_p3 = scmp.ne.s32.totalorder %s1847_s9, %s1644_s15  ;;  %p1648_p4 = scmp.lt.u32.totalorder %s1644_s15, %s1847_s9 }
 0x3d6   :  { %p1650_p5 = pnand %p1648_p4, %p1645_p3 }
 0x3d8   :  { %1653 = shalt.err (!%p1650_p5)
}
 0x3d9   :  { %1173 = dma.vmem_to_hbm [thread:$0]  %s1171_s10, 128, %s1847_s9, [#allocation4]  }
 0x3da   :  { %1660 = dma.done.wait [#allocation4], 128  }
 0x3db   :  { %1661 = vsyncadd [#allocation4], 4294967168 }
 0x3dc   :  { %1177 = vsyncpa [#allocation3], 1 }
 0x3dd   :  { %1178 = vsyncpa [#allocation6], 1 }
 0x3de   :  { %1179 = vsyncpa [#allocation9], 1 }
 0x3df   :  { %1180 = vsyncpa [#allocation4], 1 }

</bundles_post_ra>
